<compile_context>
chip_gen: v7x
topology: tpu7x:2x2x1
jax: 0.10.0
libtpu: 0.0.40
codegen_flags: <defaults>
</compile_context>

<pallas_src>
import functools

import jax
import jax.numpy as jnp
from jax.experimental import pallas as pl
from jax.experimental.pallas import tpu as pltpu


# ----------------------------------------------------------------------------
# Fused Pallas kernel: input projection -> LSTM recurrence -> FC, in one call.
# ----------------------------------------------------------------------------
def decoder_kernel(x_ref,      # (T*B, E)   time-major rows: row = t*B + b
                   wih_ref,    # (E, 4H)
                   whh_ref,    # (H, 4H)
                   b_ref,      # (1, 4H)    combined b_ih + b_hh
                   fcw_ref,    # (H, Vp)    Vp = V padded to multiple of 128
                   fcb_ref,    # (1, Vp)
                   out_ref,    # (T*B, Vp)  logits, time-major rows
                   gx_sc,      # VMEM (T*B, 4H) scratch: precomputed x-gates
                   h_sc,       # VMEM (T*B, H)  scratch: all hidden states
                   *, seq_len, batch):
    H = whh_ref.shape[0]

    # (1) Hoisted input projection: one well-shaped MXU matmul, bias folded in.
    gx_sc[...] = (
        jnp.dot(x_ref[...], wih_ref[...], preferred_element_type=jnp.float32)
        + b_ref[...]
    )

    whh = whh_ref[...]  # (H, 4H), resident for the whole recurrence

    # (2) Sequential recurrence inside the kernel (PyTorch gate order i,f,g,o).
    def step(t, carry):
        h_prev, c_prev = carry
        row = t * batch
        gates = gx_sc[pl.ds(row, batch), :] + jnp.dot(
            h_prev, whh, preferred_element_type=jnp.float32)   # (B, 4H)

        i_g = jax.nn.sigmoid(gates[:, 0 * H:1 * H])
        f_g = jax.nn.sigmoid(gates[:, 1 * H:2 * H])
        g_g = jnp.tanh(gates[:, 2 * H:3 * H])
        o_g = jax.nn.sigmoid(gates[:, 3 * H:4 * H])

        c_new = f_g * c_prev + i_g * g_g
        h_new = o_g * jnp.tanh(c_new)
        h_sc[pl.ds(row, batch), :] = h_new
        return h_new, c_new

    h0 = jnp.zeros((batch, H), jnp.float32)
    c0 = jnp.zeros((batch, H), jnp.float32)
    jax.lax.fori_loop(0, seq_len, step, (h0, c0), unroll=True)

    # (3) Fused FC over all (T*B, H) rows at once; single lane-dense store.
    out_ref[...] = (
        jnp.dot(h_sc[...], fcw_ref[...], preferred_element_type=jnp.float32)
        + fcb_ref[...]
    )


def run_decoder_kernel(x_tm2d, wih_T, whh_T, bias, fcw_pad, fcb_pad,
                       *, seq_len, batch):
    """x_tm2d: (T*B, E) time-major rows. Returns padded logits (T*B, Vp)."""
    TB, E = x_tm2d.shape
    H, G = whh_T.shape
    Vp = fcw_pad.shape[1]

    kernel = functools.partial(decoder_kernel, seq_len=seq_len, batch=batch)
    return pl.pallas_call(
        kernel,
        out_shape=jax.ShapeDtypeStruct((TB, Vp), jnp.float32),
        grid_spec=pltpu.PrefetchScalarGridSpec(
            num_scalar_prefetch=0,
            grid=(1,),  # whole sequence handled inside one kernel invocation
            in_specs=[
                pl.BlockSpec((TB, E), lambda i: (0, 0)),
                pl.BlockSpec((E, G), lambda i: (0, 0)),
                pl.BlockSpec((H, G), lambda i: (0, 0)),
                pl.BlockSpec((1, G), lambda i: (0, 0)),
                pl.BlockSpec((H, Vp), lambda i: (0, 0)),
                pl.BlockSpec((1, Vp), lambda i: (0, 0)),
            ],
            out_specs=pl.BlockSpec((TB, Vp), lambda i: (0, 0)),
            scratch_shapes=[
                pltpu.VMEM((TB, G), jnp.float32),   # precomputed x-gates
                pltpu.VMEM((TB, H), jnp.float32),   # all hidden states
            ],
        ),
        compiler_params=pltpu.CompilerParams(
            dimension_semantics=("arbitrary",)),
    )(x_tm2d, wih_T, whh_T, bias, fcw_pad, fcb_pad)


# ----------------------------------------------------------------------------
# Forward wrapper (embedding gather + concat are glue; all matmuls in Pallas)
# ----------------------------------------------------------------------------
@jax.jit
def decoder_forward(features, captions, params):
    """DecoderRNN.forward: (B,E) features, (B,Tcap) int captions -> (B,T,V)."""
    cap = captions[:, :-1]                                    # (B, Tcap-1)
    emb = jnp.take(params["embed_w"], cap, axis=0)            # (B, Tcap-1, E)
    inputs = jnp.concatenate([features[:, None, :], emb], axis=1)  # (B, T, E)

    B, T, E = inputs.shape
    V = params["fc_w_T"].shape[1]
    Vp = params["fc_w_Tp"].shape[1]

    # Single small rearrangement to time-major 2-D rows (row = t*B + b); the
    # heavy h_all HBM round-trip / transpose of the old version is gone.
    x_tm2d = jnp.transpose(inputs, (1, 0, 2)).reshape(T * B, E)

    logits_pad = run_decoder_kernel(
        x_tm2d, params["wih_T"], params["whh_T"], params["b"],
        params["fc_w_Tp"], params["fc_bp"], seq_len=T, batch=B)   # (T*B, Vp)

    logits = logits_pad.reshape(T, B, Vp)[:, :, :V]            # drop lane pad
    return jnp.transpose(logits, (1, 0, 2))                    # (B, T, V)


# ----------------------------------------------------------------------------
# Parameter construction (deterministic, matches nn.Module shapes)
# ----------------------------------------------------------------------------
def make_params(key, embed_size, hidden_size, vocab_size):
    k_emb, k_fc, k_wih, k_whh, k_bih, k_bhh = jax.random.split(key, 6)

    # xavier_uniform_ for embed (V, E) and fc weight (V, H)
    emb_bound = jnp.sqrt(6.0 / (vocab_size + embed_size))
    embed_w = jax.random.uniform(k_emb, (vocab_size, embed_size),
                                 jnp.float32, -emb_bound, emb_bound)
    fc_bound = jnp.sqrt(6.0 / (vocab_size + hidden_size))
    fc_w = jax.random.uniform(k_fc, (vocab_size, hidden_size),
                              jnp.float32, -fc_bound, fc_bound)
    fc_b = jnp.zeros((vocab_size,), jnp.float32)  # deterministic stand-in for
    # nn.Linear's default uniform bias init (forward math is unaffected)

    # nn.LSTM default init: U(-1/sqrt(H), 1/sqrt(H)) for all weights/biases
    s = 1.0 / jnp.sqrt(hidden_size)
    w_ih = jax.random.uniform(k_wih, (4 * hidden_size, embed_size),
                              jnp.float32, -s, s)
    w_hh = jax.random.uniform(k_whh, (4 * hidden_size, hidden_size),
                              jnp.float32, -s, s)
    b_ih = jax.random.uniform(k_bih, (4 * hidden_size,), jnp.float32, -s, s)
    b_hh = jax.random.uniform(k_bhh, (4 * hidden_size,), jnp.float32, -s, s)

    # Lane-dense padding of the FC weight/bias (V -> multiple of 128), done once.
    v_pad = ((vocab_size + 127) // 128) * 128
    fc_w_T = jnp.transpose(fc_w)                              # (H, V)
    fc_w_Tp = jnp.pad(fc_w_T, ((0, 0), (0, v_pad - vocab_size)))
    fc_bp = jnp.pad(fc_b[None, :], ((0, 0), (0, v_pad - vocab_size)))

    return {
        "embed_w": embed_w,
        "wih_T": jnp.transpose(w_ih),            # (E, 4H)
        "whh_T": jnp.transpose(w_hh),            # (H, 4H)
        "b": (b_ih + b_hh)[None, :],             # (1, 4H)
        "fc_w_T": fc_w_T,                        # (H, V)   (reference / V)
        "fc_b": fc_b[None, :],                   # (1, V)
        "fc_w_Tp": fc_w_Tp,                      # (H, Vp)  (kernel, lane-dense)
        "fc_bp": fc_bp,                          # (1, Vp)
    }


# ----------------------------------------------------------------------------
# Pure-JAX reference (for correctness check)
# ----------------------------------------------------------------------------
def ref_forward(features, captions, p):
    emb = jnp.take(p["embed_w"], captions[:, :-1], axis=0)
    x = jnp.concatenate([features[:, None, :], emb], axis=1)   # (B, T, E)
    B, T, _ = x.shape
    H = p["whh_T"].shape[0]

    def step(carry, xt):
        h, c = carry
        gates = xt @ p["wih_T"] + h @ p["whh_T"] + p["b"][0]
        i = jax.nn.sigmoid(gates[:, 0 * H:1 * H])
        f = jax.nn.sigmoid(gates[:, 1 * H:2 * H])
        g = jnp.tanh(gates[:, 2 * H:3 * H])
        o = jax.nn.sigmoid(gates[:, 3 * H:4 * H])
        c = f * c + i * g
        h = o * jnp.tanh(c)
        return (h, c), h

    init = (jnp.zeros((B, H), jnp.float32), jnp.zeros((B, H), jnp.float32))
    _, hs = jax.lax.scan(step, init, jnp.transpose(x, (1, 0, 2)))
    h_all = jnp.transpose(hs, (1, 0, 2))
    return h_all @ p["fc_w_T"] + p["fc_b"][0]


# ----------------------------------------------------------------------------
if __name__ == "__main__":
    B = 2            # batch
    E = 32           # embed_size
    H = 32           # hidden_size
    V = 64           # vocab_size
    T_CAP = 8        # caption length (forward drops last token, prepends feature)

    key = jax.random.PRNGKey(0)
    k_params, k_feat, k_cap = jax.random.split(key, 3)

    params = make_params(k_params, E, H, V)
    features = jax.random.normal(k_feat, (B, E), jnp.float32)
    captions = jax.random.randint(k_cap, (B, T_CAP), 0, V, jnp.int32)

    logits = decoder_forward(features, captions, params)
    logits = jax.block_until_ready(logits)

    expected = jax.block_until_ready(ref_forward(features, captions, params))
    assert logits.shape == (B, T_CAP, V), logits.shape
    assert jnp.allclose(logits, expected, atol=1e-4, rtol=1e-4), (
        float(jnp.max(jnp.abs(logits - expected))))

    print("KERNEL_OK")
</pallas_src>

<mosaic_0001>
module attributes {stable_mosaic.version = 11 : i64} {
  func.func @decoder_kernel(%arg0: i32, %arg1: memref<16x32xf32, #tpu.memory_space<vmem>>, %arg2: memref<32x128xf32, #tpu.memory_space<vmem>>, %arg3: memref<32x128xf32, #tpu.memory_space<vmem>>, %arg4: memref<1x128xf32, #tpu.memory_space<vmem>>, %arg5: memref<32x128xf32, #tpu.memory_space<vmem>>, %arg6: memref<1x128xf32, #tpu.memory_space<vmem>>, %arg7: memref<16x128xf32, #tpu.memory_space<vmem>>, %arg8: memref<16x128xf32, #tpu.memory_space<vmem>>, %arg9: memref<16x32xf32, #tpu.memory_space<vmem>>) attributes {dimension_semantics = [#tpu.dimension_semantics<arbitrary>], iteration_bounds = array<i64: 1>, scalar_prefetch = 0 : i64, scratch_operands = 2 : i64, tpu.core_type = #tpu.core_type<tc>, window_params = [{pipeline_mode = #tpu.pipeline_mode<synchronous>, transform_indices = @transform_0, window_bounds = array<i64: 16, 32>}, {pipeline_mode = #tpu.pipeline_mode<synchronous>, transform_indices = @transform_1, window_bounds = array<i64: 32, 128>}, {pipeline_mode = #tpu.pipeline_mode<synchronous>, transform_indices = @transform_2, window_bounds = array<i64: 32, 128>}, {pipeline_mode = #tpu.pipeline_mode<synchronous>, transform_indices = @transform_3, window_bounds = array<i64: 1, 128>}, {pipeline_mode = #tpu.pipeline_mode<synchronous>, transform_indices = @transform_4, window_bounds = array<i64: 32, 128>}, {pipeline_mode = #tpu.pipeline_mode<synchronous>, transform_indices = @transform_5, window_bounds = array<i64: 1, 128>}, {pipeline_mode = #tpu.pipeline_mode<synchronous>, transform_indices = @transform_6, window_bounds = array<i64: 16, 128>}]} {
    %c0 = arith.constant 0 : index
    %c0_0 = arith.constant 0 : index
    %0 = vector.load %arg1[%c0, %c0_0] : memref<16x32xf32, #tpu.memory_space<vmem>>, vector<16x32xf32>
    %c0_1 = arith.constant 0 : index
    %c0_2 = arith.constant 0 : index
    %1 = vector.load %arg2[%c0_1, %c0_2] : memref<32x128xf32, #tpu.memory_space<vmem>>, vector<32x128xf32>
    %cst = arith.constant dense<0.000000e+00> : vector<16x128xf32>
    %2 = tpu.matmul %0, %1, %cst {dimension_numbers = #tpu.dot_dimension_numbers<[1], [0], [0], [1], [0, 0, 1, 1], [], []>} : vector<16x32xf32>, vector<32x128xf32>, vector<16x128xf32> -> vector<16x128xf32>
    %c0_3 = arith.constant 0 : index
    %c0_4 = arith.constant 0 : index
    %3 = vector.load %arg4[%c0_3, %c0_4] : memref<1x128xf32, #tpu.memory_space<vmem>>, vector<1x128xf32>
    %4 = vector.broadcast %3 : vector<1x128xf32> to vector<16x128xf32>
    %5 = arith.addf %2, %4 : vector<16x128xf32>
    %c0_5 = arith.constant 0 : index
    %c0_6 = arith.constant 0 : index
    %6 = vector.load %arg8[%c0_5, %c0_6] : memref<16x128xf32, #tpu.memory_space<vmem>>, vector<16x128xf32>
    tpu.vector_store %arg8[%c0_5, %c0_6], %5 {strides = array<i32>} : memref<16x128xf32, #tpu.memory_space<vmem>>, vector<16x128xf32>,
    %c0_7 = arith.constant 0 : index
    %c0_8 = arith.constant 0 : index
    %7 = vector.load %arg3[%c0_7, %c0_8] : memref<32x128xf32, #tpu.memory_space<vmem>>, vector<32x128xf32>
    %cst_9 = arith.constant 0.000000e+00 : f32
    %8 = vector.broadcast %cst_9 : f32 to vector<2x32xf32>
    %cst_10 = arith.constant 0.000000e+00 : f32
    %9 = vector.broadcast %cst_10 : f32 to vector<2x32xf32>
    %c0_i32 = arith.constant 0 : i32
    %c2_i32 = arith.constant 2 : i32
    %10 = arith.muli %c0_i32, %c2_i32 : i32
    %11 = arith.index_cast %10 : i32 to index
    %c0_11 = arith.constant 0 : index
    %12 = vector.load %arg8[%11, %c0_11] : memref<16x128xf32, #tpu.memory_space<vmem>>, vector<2x128xf32>
    %cst_12 = arith.constant dense<0.000000e+00> : vector<2x128xf32>
    %13 = tpu.matmul %8, %7, %cst_12 {dimension_numbers = #tpu.dot_dimension_numbers<[1], [0], [0], [1], [0, 0, 1, 1], [], []>} : vector<2x32xf32>, vector<32x128xf32>, vector<2x128xf32> -> vector<2x128xf32>
    %14 = arith.addf %12, %13 : vector<2x128xf32>
    %15 = vector.extract_strided_slice %14 {offsets = [0, 0], sizes = [2, 32], strides = [1, 1]} : vector<2x128xf32> to vector<2x32xf32>
    %16 = arith.negf %15 : vector<2x32xf32>
    %17 = math.exp %16 : vector<2x32xf32>
    %cst_13 = arith.constant 1.000000e+00 : f32
    %18 = vector.broadcast %cst_13 : f32 to vector<2x32xf32>
    %19 = arith.addf %18, %17 : vector<2x32xf32>
    %20 = arith.divf %18, %19 : vector<2x32xf32>
    %21 = vector.extract_strided_slice %14 {offsets = [0, 32], sizes = [2, 32], strides = [1, 1]} : vector<2x128xf32> to vector<2x32xf32>
    %22 = arith.negf %21 : vector<2x32xf32>
    %23 = math.exp %22 : vector<2x32xf32>
    %cst_14 = arith.constant 1.000000e+00 : f32
    %24 = vector.broadcast %cst_14 : f32 to vector<2x32xf32>
    %25 = arith.addf %24, %23 : vector<2x32xf32>
    %26 = arith.divf %24, %25 : vector<2x32xf32>
    %27 = vector.extract_strided_slice %14 {offsets = [0, 64], sizes = [2, 32], strides = [1, 1]} : vector<2x128xf32> to vector<2x32xf32>
    %28 = math.tanh %27 : vector<2x32xf32>
    %29 = vector.extract_strided_slice %14 {offsets = [0, 96], sizes = [2, 32], strides = [1, 1]} : vector<2x128xf32> to vector<2x32xf32>
    %30 = arith.negf %29 : vector<2x32xf32>
    %31 = math.exp %30 : vector<2x32xf32>
    %cst_15 = arith.constant 1.000000e+00 : f32
    %32 = vector.broadcast %cst_15 : f32 to vector<2x32xf32>
    %33 = arith.addf %32, %31 : vector<2x32xf32>
    %34 = arith.divf %32, %33 : vector<2x32xf32>
    %35 = arith.mulf %26, %9 : vector<2x32xf32>
    %36 = arith.mulf %20, %28 : vector<2x32xf32>
    %37 = arith.addf %35, %36 : vector<2x32xf32>
    %38 = math.tanh %37 : vector<2x32xf32>
    %39 = arith.mulf %34, %38 : vector<2x32xf32>
    %40 = arith.index_cast %10 : i32 to index
    %c0_16 = arith.constant 0 : index
    %41 = vector.load %arg9[%40, %c0_16] : memref<16x32xf32, #tpu.memory_space<vmem>>, vector<2x32xf32>
    tpu.vector_store %arg9[%40, %c0_16], %39 {strides = array<i32>} : memref<16x32xf32, #tpu.memory_space<vmem>>, vector<2x32xf32>,
    %c1_i32 = arith.constant 1 : i32
    %c2_i32_17 = arith.constant 2 : i32
    %42 = arith.muli %c1_i32, %c2_i32_17 : i32
    %43 = arith.index_cast %42 : i32 to index
    %c0_18 = arith.constant 0 : index
    %44 = vector.load %arg8[%43, %c0_18] : memref<16x128xf32, #tpu.memory_space<vmem>>, vector<2x128xf32>
    %cst_19 = arith.constant dense<0.000000e+00> : vector<2x128xf32>
    %45 = tpu.matmul %39, %7, %cst_19 {dimension_numbers = #tpu.dot_dimension_numbers<[1], [0], [0], [1], [0, 0, 1, 1], [], []>} : vector<2x32xf32>, vector<32x128xf32>, vector<2x128xf32> -> vector<2x128xf32>
    %46 = arith.addf %44, %45 : vector<2x128xf32>
    %47 = vector.extract_strided_slice %46 {offsets = [0, 0], sizes = [2, 32], strides = [1, 1]} : vector<2x128xf32> to vector<2x32xf32>
    %48 = arith.negf %47 : vector<2x32xf32>
    %49 = math.exp %48 : vector<2x32xf32>
    %cst_20 = arith.constant 1.000000e+00 : f32
    %50 = vector.broadcast %cst_20 : f32 to vector<2x32xf32>
    %51 = arith.addf %50, %49 : vector<2x32xf32>
    %52 = arith.divf %50, %51 : vector<2x32xf32>
    %53 = vector.extract_strided_slice %46 {offsets = [0, 32], sizes = [2, 32], strides = [1, 1]} : vector<2x128xf32> to vector<2x32xf32>
    %54 = arith.negf %53 : vector<2x32xf32>
    %55 = math.exp %54 : vector<2x32xf32>
    %cst_21 = arith.constant 1.000000e+00 : f32
    %56 = vector.broadcast %cst_21 : f32 to vector<2x32xf32>
    %57 = arith.addf %56, %55 : vector<2x32xf32>
    %58 = arith.divf %56, %57 : vector<2x32xf32>
    %59 = vector.extract_strided_slice %46 {offsets = [0, 64], sizes = [2, 32], strides = [1, 1]} : vector<2x128xf32> to vector<2x32xf32>
    %60 = math.tanh %59 : vector<2x32xf32>
    %61 = vector.extract_strided_slice %46 {offsets = [0, 96], sizes = [2, 32], strides = [1, 1]} : vector<2x128xf32> to vector<2x32xf32>
    %62 = arith.negf %61 : vector<2x32xf32>
    %63 = math.exp %62 : vector<2x32xf32>
    %cst_22 = arith.constant 1.000000e+00 : f32
    %64 = vector.broadcast %cst_22 : f32 to vector<2x32xf32>
    %65 = arith.addf %64, %63 : vector<2x32xf32>
    %66 = arith.divf %64, %65 : vector<2x32xf32>
    %67 = arith.mulf %58, %37 : vector<2x32xf32>
    %68 = arith.mulf %52, %60 : vector<2x32xf32>
    %69 = arith.addf %67, %68 : vector<2x32xf32>
    %70 = math.tanh %69 : vector<2x32xf32>
    %71 = arith.mulf %66, %70 : vector<2x32xf32>
    %72 = arith.index_cast %42 : i32 to index
    %c0_23 = arith.constant 0 : index
    %73 = vector.load %arg9[%72, %c0_23] : memref<16x32xf32, #tpu.memory_space<vmem>>, vector<2x32xf32>
    tpu.vector_store %arg9[%72, %c0_23], %71 {strides = array<i32>} : memref<16x32xf32, #tpu.memory_space<vmem>>, vector<2x32xf32>,
    %c2_i32_24 = arith.constant 2 : i32
    %c2_i32_25 = arith.constant 2 : i32
    %74 = arith.muli %c2_i32_24, %c2_i32_25 : i32
    %75 = arith.index_cast %74 : i32 to index
    %c0_26 = arith.constant 0 : index
    %76 = vector.load %arg8[%75, %c0_26] : memref<16x128xf32, #tpu.memory_space<vmem>>, vector<2x128xf32>
    %cst_27 = arith.constant dense<0.000000e+00> : vector<2x128xf32>
    %77 = tpu.matmul %71, %7, %cst_27 {dimension_numbers = #tpu.dot_dimension_numbers<[1], [0], [0], [1], [0, 0, 1, 1], [], []>} : vector<2x32xf32>, vector<32x128xf32>, vector<2x128xf32> -> vector<2x128xf32>
    %78 = arith.addf %76, %77 : vector<2x128xf32>
    %79 = vector.extract_strided_slice %78 {offsets = [0, 0], sizes = [2, 32], strides = [1, 1]} : vector<2x128xf32> to vector<2x32xf32>
    %80 = arith.negf %79 : vector<2x32xf32>
    %81 = math.exp %80 : vector<2x32xf32>
    %cst_28 = arith.constant 1.000000e+00 : f32
    %82 = vector.broadcast %cst_28 : f32 to vector<2x32xf32>
    %83 = arith.addf %82, %81 : vector<2x32xf32>
    %84 = arith.divf %82, %83 : vector<2x32xf32>
    %85 = vector.extract_strided_slice %78 {offsets = [0, 32], sizes = [2, 32], strides = [1, 1]} : vector<2x128xf32> to vector<2x32xf32>
    %86 = arith.negf %85 : vector<2x32xf32>
    %87 = math.exp %86 : vector<2x32xf32>
    %cst_29 = arith.constant 1.000000e+00 : f32
    %88 = vector.broadcast %cst_29 : f32 to vector<2x32xf32>
    %89 = arith.addf %88, %87 : vector<2x32xf32>
    %90 = arith.divf %88, %89 : vector<2x32xf32>
    %91 = vector.extract_strided_slice %78 {offsets = [0, 64], sizes = [2, 32], strides = [1, 1]} : vector<2x128xf32> to vector<2x32xf32>
    %92 = math.tanh %91 : vector<2x32xf32>
    %93 = vector.extract_strided_slice %78 {offsets = [0, 96], sizes = [2, 32], strides = [1, 1]} : vector<2x128xf32> to vector<2x32xf32>
    %94 = arith.negf %93 : vector<2x32xf32>
    %95 = math.exp %94 : vector<2x32xf32>
    %cst_30 = arith.constant 1.000000e+00 : f32
    %96 = vector.broadcast %cst_30 : f32 to vector<2x32xf32>
    %97 = arith.addf %96, %95 : vector<2x32xf32>
    %98 = arith.divf %96, %97 : vector<2x32xf32>
    %99 = arith.mulf %90, %69 : vector<2x32xf32>
    %100 = arith.mulf %84, %92 : vector<2x32xf32>
    %101 = arith.addf %99, %100 : vector<2x32xf32>
    %102 = math.tanh %101 : vector<2x32xf32>
    %103 = arith.mulf %98, %102 : vector<2x32xf32>
    %104 = arith.index_cast %74 : i32 to index
    %c0_31 = arith.constant 0 : index
    %105 = vector.load %arg9[%104, %c0_31] : memref<16x32xf32, #tpu.memory_space<vmem>>, vector<2x32xf32>
    tpu.vector_store %arg9[%104, %c0_31], %103 {strides = array<i32>} : memref<16x32xf32, #tpu.memory_space<vmem>>, vector<2x32xf32>,
    %c3_i32 = arith.constant 3 : i32
    %c2_i32_32 = arith.constant 2 : i32
    %106 = arith.muli %c3_i32, %c2_i32_32 : i32
    %107 = arith.index_cast %106 : i32 to index
    %c0_33 = arith.constant 0 : index
    %108 = vector.load %arg8[%107, %c0_33] : memref<16x128xf32, #tpu.memory_space<vmem>>, vector<2x128xf32>
    %cst_34 = arith.constant dense<0.000000e+00> : vector<2x128xf32>
    %109 = tpu.matmul %103, %7, %cst_34 {dimension_numbers = #tpu.dot_dimension_numbers<[1], [0], [0], [1], [0, 0, 1, 1], [], []>} : vector<2x32xf32>, vector<32x128xf32>, vector<2x128xf32> -> vector<2x128xf32>
    %110 = arith.addf %108, %109 : vector<2x128xf32>
    %111 = vector.extract_strided_slice %110 {offsets = [0, 0], sizes = [2, 32], strides = [1, 1]} : vector<2x128xf32> to vector<2x32xf32>
    %112 = arith.negf %111 : vector<2x32xf32>
    %113 = math.exp %112 : vector<2x32xf32>
    %cst_35 = arith.constant 1.000000e+00 : f32
    %114 = vector.broadcast %cst_35 : f32 to vector<2x32xf32>
    %115 = arith.addf %114, %113 : vector<2x32xf32>
    %116 = arith.divf %114, %115 : vector<2x32xf32>
    %117 = vector.extract_strided_slice %110 {offsets = [0, 32], sizes = [2, 32], strides = [1, 1]} : vector<2x128xf32> to vector<2x32xf32>
    %118 = arith.negf %117 : vector<2x32xf32>
    %119 = math.exp %118 : vector<2x32xf32>
    %cst_36 = arith.constant 1.000000e+00 : f32
    %120 = vector.broadcast %cst_36 : f32 to vector<2x32xf32>
    %121 = arith.addf %120, %119 : vector<2x32xf32>
    %122 = arith.divf %120, %121 : vector<2x32xf32>
    %123 = vector.extract_strided_slice %110 {offsets = [0, 64], sizes = [2, 32], strides = [1, 1]} : vector<2x128xf32> to vector<2x32xf32>
    %124 = math.tanh %123 : vector<2x32xf32>
    %125 = vector.extract_strided_slice %110 {offsets = [0, 96], sizes = [2, 32], strides = [1, 1]} : vector<2x128xf32> to vector<2x32xf32>
    %126 = arith.negf %125 : vector<2x32xf32>
    %127 = math.exp %126 : vector<2x32xf32>
    %cst_37 = arith.constant 1.000000e+00 : f32
    %128 = vector.broadcast %cst_37 : f32 to vector<2x32xf32>
    %129 = arith.addf %128, %127 : vector<2x32xf32>
    %130 = arith.divf %128, %129 : vector<2x32xf32>
    %131 = arith.mulf %122, %101 : vector<2x32xf32>
    %132 = arith.mulf %116, %124 : vector<2x32xf32>
    %133 = arith.addf %131, %132 : vector<2x32xf32>
    %134 = math.tanh %133 : vector<2x32xf32>
    %135 = arith.mulf %130, %134 : vector<2x32xf32>
    %136 = arith.index_cast %106 : i32 to index
    %c0_38 = arith.constant 0 : index
    %137 = vector.load %arg9[%136, %c0_38] : memref<16x32xf32, #tpu.memory_space<vmem>>, vector<2x32xf32>
    tpu.vector_store %arg9[%136, %c0_38], %135 {strides = array<i32>} : memref<16x32xf32, #tpu.memory_space<vmem>>, vector<2x32xf32>,
    %c4_i32 = arith.constant 4 : i32
    %c2_i32_39 = arith.constant 2 : i32
    %138 = arith.muli %c4_i32, %c2_i32_39 : i32
    %139 = arith.index_cast %138 : i32 to index
    %c0_40 = arith.constant 0 : index
    %140 = vector.load %arg8[%139, %c0_40] : memref<16x128xf32, #tpu.memory_space<vmem>>, vector<2x128xf32>
    %cst_41 = arith.constant dense<0.000000e+00> : vector<2x128xf32>
    %141 = tpu.matmul %135, %7, %cst_41 {dimension_numbers = #tpu.dot_dimension_numbers<[1], [0], [0], [1], [0, 0, 1, 1], [], []>} : vector<2x32xf32>, vector<32x128xf32>, vector<2x128xf32> -> vector<2x128xf32>
    %142 = arith.addf %140, %141 : vector<2x128xf32>
    %143 = vector.extract_strided_slice %142 {offsets = [0, 0], sizes = [2, 32], strides = [1, 1]} : vector<2x128xf32> to vector<2x32xf32>
    %144 = arith.negf %143 : vector<2x32xf32>
    %145 = math.exp %144 : vector<2x32xf32>
    %cst_42 = arith.constant 1.000000e+00 : f32
    %146 = vector.broadcast %cst_42 : f32 to vector<2x32xf32>
    %147 = arith.addf %146, %145 : vector<2x32xf32>
    %148 = arith.divf %146, %147 : vector<2x32xf32>
    %149 = vector.extract_strided_slice %142 {offsets = [0, 32], sizes = [2, 32], strides = [1, 1]} : vector<2x128xf32> to vector<2x32xf32>
    %150 = arith.negf %149 : vector<2x32xf32>
    %151 = math.exp %150 : vector<2x32xf32>
    %cst_43 = arith.constant 1.000000e+00 : f32
    %152 = vector.broadcast %cst_43 : f32 to vector<2x32xf32>
    %153 = arith.addf %152, %151 : vector<2x32xf32>
    %154 = arith.divf %152, %153 : vector<2x32xf32>
    %155 = vector.extract_strided_slice %142 {offsets = [0, 64], sizes = [2, 32], strides = [1, 1]} : vector<2x128xf32> to vector<2x32xf32>
    %156 = math.tanh %155 : vector<2x32xf32>
    %157 = vector.extract_strided_slice %142 {offsets = [0, 96], sizes = [2, 32], strides = [1, 1]} : vector<2x128xf32> to vector<2x32xf32>
    %158 = arith.negf %157 : vector<2x32xf32>
    %159 = math.exp %158 : vector<2x32xf32>
    %cst_44 = arith.constant 1.000000e+00 : f32
    %160 = vector.broadcast %cst_44 : f32 to vector<2x32xf32>
    %161 = arith.addf %160, %159 : vector<2x32xf32>
    %162 = arith.divf %160, %161 : vector<2x32xf32>
    %163 = arith.mulf %154, %133 : vector<2x32xf32>
    %164 = arith.mulf %148, %156 : vector<2x32xf32>
    %165 = arith.addf %163, %164 : vector<2x32xf32>
    %166 = math.tanh %165 : vector<2x32xf32>
    %167 = arith.mulf %162, %166 : vector<2x32xf32>
    %168 = arith.index_cast %138 : i32 to index
    %c0_45 = arith.constant 0 : index
    %169 = vector.load %arg9[%168, %c0_45] : memref<16x32xf32, #tpu.memory_space<vmem>>, vector<2x32xf32>
    tpu.vector_store %arg9[%168, %c0_45], %167 {strides = array<i32>} : memref<16x32xf32, #tpu.memory_space<vmem>>, vector<2x32xf32>,
    %c5_i32 = arith.constant 5 : i32
    %c2_i32_46 = arith.constant 2 : i32
    %170 = arith.muli %c5_i32, %c2_i32_46 : i32
    %171 = arith.index_cast %170 : i32 to index
    %c0_47 = arith.constant 0 : index
    %172 = vector.load %arg8[%171, %c0_47] : memref<16x128xf32, #tpu.memory_space<vmem>>, vector<2x128xf32>
    %cst_48 = arith.constant dense<0.000000e+00> : vector<2x128xf32>
    %173 = tpu.matmul %167, %7, %cst_48 {dimension_numbers = #tpu.dot_dimension_numbers<[1], [0], [0], [1], [0, 0, 1, 1], [], []>} : vector<2x32xf32>, vector<32x128xf32>, vector<2x128xf32> -> vector<2x128xf32>
    %174 = arith.addf %172, %173 : vector<2x128xf32>
    %175 = vector.extract_strided_slice %174 {offsets = [0, 0], sizes = [2, 32], strides = [1, 1]} : vector<2x128xf32> to vector<2x32xf32>
    %176 = arith.negf %175 : vector<2x32xf32>
    %177 = math.exp %176 : vector<2x32xf32>
    %cst_49 = arith.constant 1.000000e+00 : f32
    %178 = vector.broadcast %cst_49 : f32 to vector<2x32xf32>
    %179 = arith.addf %178, %177 : vector<2x32xf32>
    %180 = arith.divf %178, %179 : vector<2x32xf32>
    %181 = vector.extract_strided_slice %174 {offsets = [0, 32], sizes = [2, 32], strides = [1, 1]} : vector<2x128xf32> to vector<2x32xf32>
    %182 = arith.negf %181 : vector<2x32xf32>
    %183 = math.exp %182 : vector<2x32xf32>
    %cst_50 = arith.constant 1.000000e+00 : f32
    %184 = vector.broadcast %cst_50 : f32 to vector<2x32xf32>
    %185 = arith.addf %184, %183 : vector<2x32xf32>
    %186 = arith.divf %184, %185 : vector<2x32xf32>
    %187 = vector.extract_strided_slice %174 {offsets = [0, 64], sizes = [2, 32], strides = [1, 1]} : vector<2x128xf32> to vector<2x32xf32>
    %188 = math.tanh %187 : vector<2x32xf32>
    %189 = vector.extract_strided_slice %174 {offsets = [0, 96], sizes = [2, 32], strides = [1, 1]} : vector<2x128xf32> to vector<2x32xf32>
    %190 = arith.negf %189 : vector<2x32xf32>
    %191 = math.exp %190 : vector<2x32xf32>
    %cst_51 = arith.constant 1.000000e+00 : f32
    %192 = vector.broadcast %cst_51 : f32 to vector<2x32xf32>
    %193 = arith.addf %192, %191 : vector<2x32xf32>
    %194 = arith.divf %192, %193 : vector<2x32xf32>
    %195 = arith.mulf %186, %165 : vector<2x32xf32>
    %196 = arith.mulf %180, %188 : vector<2x32xf32>
    %197 = arith.addf %195, %196 : vector<2x32xf32>
    %198 = math.tanh %197 : vector<2x32xf32>
    %199 = arith.mulf %194, %198 : vector<2x32xf32>
    %200 = arith.index_cast %170 : i32 to index
    %c0_52 = arith.constant 0 : index
    %201 = vector.load %arg9[%200, %c0_52] : memref<16x32xf32, #tpu.memory_space<vmem>>, vector<2x32xf32>
    tpu.vector_store %arg9[%200, %c0_52], %199 {strides = array<i32>} : memref<16x32xf32, #tpu.memory_space<vmem>>, vector<2x32xf32>,
    %c6_i32 = arith.constant 6 : i32
    %c2_i32_53 = arith.constant 2 : i32
    %202 = arith.muli %c6_i32, %c2_i32_53 : i32
    %203 = arith.index_cast %202 : i32 to index
    %c0_54 = arith.constant 0 : index
    %204 = vector.load %arg8[%203, %c0_54] : memref<16x128xf32, #tpu.memory_space<vmem>>, vector<2x128xf32>
    %cst_55 = arith.constant dense<0.000000e+00> : vector<2x128xf32>
    %205 = tpu.matmul %199, %7, %cst_55 {dimension_numbers = #tpu.dot_dimension_numbers<[1], [0], [0], [1], [0, 0, 1, 1], [], []>} : vector<2x32xf32>, vector<32x128xf32>, vector<2x128xf32> -> vector<2x128xf32>
    %206 = arith.addf %204, %205 : vector<2x128xf32>
    %207 = vector.extract_strided_slice %206 {offsets = [0, 0], sizes = [2, 32], strides = [1, 1]} : vector<2x128xf32> to vector<2x32xf32>
    %208 = arith.negf %207 : vector<2x32xf32>
    %209 = math.exp %208 : vector<2x32xf32>
    %cst_56 = arith.constant 1.000000e+00 : f32
    %210 = vector.broadcast %cst_56 : f32 to vector<2x32xf32>
    %211 = arith.addf %210, %209 : vector<2x32xf32>
    %212 = arith.divf %210, %211 : vector<2x32xf32>
    %213 = vector.extract_strided_slice %206 {offsets = [0, 32], sizes = [2, 32], strides = [1, 1]} : vector<2x128xf32> to vector<2x32xf32>
    %214 = arith.negf %213 : vector<2x32xf32>
    %215 = math.exp %214 : vector<2x32xf32>
    %cst_57 = arith.constant 1.000000e+00 : f32
    %216 = vector.broadcast %cst_57 : f32 to vector<2x32xf32>
    %217 = arith.addf %216, %215 : vector<2x32xf32>
    %218 = arith.divf %216, %217 : vector<2x32xf32>
    %219 = vector.extract_strided_slice %206 {offsets = [0, 64], sizes = [2, 32], strides = [1, 1]} : vector<2x128xf32> to vector<2x32xf32>
    %220 = math.tanh %219 : vector<2x32xf32>
    %221 = vector.extract_strided_slice %206 {offsets = [0, 96], sizes = [2, 32], strides = [1, 1]} : vector<2x128xf32> to vector<2x32xf32>
    %222 = arith.negf %221 : vector<2x32xf32>
    %223 = math.exp %222 : vector<2x32xf32>
    %cst_58 = arith.constant 1.000000e+00 : f32
    %224 = vector.broadcast %cst_58 : f32 to vector<2x32xf32>
    %225 = arith.addf %224, %223 : vector<2x32xf32>
    %226 = arith.divf %224, %225 : vector<2x32xf32>
    %227 = arith.mulf %218, %197 : vector<2x32xf32>
    %228 = arith.mulf %212, %220 : vector<2x32xf32>
    %229 = arith.addf %227, %228 : vector<2x32xf32>
    %230 = math.tanh %229 : vector<2x32xf32>
    %231 = arith.mulf %226, %230 : vector<2x32xf32>
    %232 = arith.index_cast %202 : i32 to index
    %c0_59 = arith.constant 0 : index
    %233 = vector.load %arg9[%232, %c0_59] : memref<16x32xf32, #tpu.memory_space<vmem>>, vector<2x32xf32>
    tpu.vector_store %arg9[%232, %c0_59], %231 {strides = array<i32>} : memref<16x32xf32, #tpu.memory_space<vmem>>, vector<2x32xf32>,
    %c7_i32 = arith.constant 7 : i32
    %c2_i32_60 = arith.constant 2 : i32
    %234 = arith.muli %c7_i32, %c2_i32_60 : i32
    %235 = arith.index_cast %234 : i32 to index
    %c0_61 = arith.constant 0 : index
    %236 = vector.load %arg8[%235, %c0_61] : memref<16x128xf32, #tpu.memory_space<vmem>>, vector<2x128xf32>
    %cst_62 = arith.constant dense<0.000000e+00> : vector<2x128xf32>
    %237 = tpu.matmul %231, %7, %cst_62 {dimension_numbers = #tpu.dot_dimension_numbers<[1], [0], [0], [1], [0, 0, 1, 1], [], []>} : vector<2x32xf32>, vector<32x128xf32>, vector<2x128xf32> -> vector<2x128xf32>
    %238 = arith.addf %236, %237 : vector<2x128xf32>
    %239 = vector.extract_strided_slice %238 {offsets = [0, 0], sizes = [2, 32], strides = [1, 1]} : vector<2x128xf32> to vector<2x32xf32>
    %240 = arith.negf %239 : vector<2x32xf32>
    %241 = math.exp %240 : vector<2x32xf32>
    %cst_63 = arith.constant 1.000000e+00 : f32
    %242 = vector.broadcast %cst_63 : f32 to vector<2x32xf32>
    %243 = arith.addf %242, %241 : vector<2x32xf32>
    %244 = arith.divf %242, %243 : vector<2x32xf32>
    %245 = vector.extract_strided_slice %238 {offsets = [0, 32], sizes = [2, 32], strides = [1, 1]} : vector<2x128xf32> to vector<2x32xf32>
    %246 = arith.negf %245 : vector<2x32xf32>
    %247 = math.exp %246 : vector<2x32xf32>
    %cst_64 = arith.constant 1.000000e+00 : f32
    %248 = vector.broadcast %cst_64 : f32 to vector<2x32xf32>
    %249 = arith.addf %248, %247 : vector<2x32xf32>
    %250 = arith.divf %248, %249 : vector<2x32xf32>
    %251 = vector.extract_strided_slice %238 {offsets = [0, 64], sizes = [2, 32], strides = [1, 1]} : vector<2x128xf32> to vector<2x32xf32>
    %252 = math.tanh %251 : vector<2x32xf32>
    %253 = vector.extract_strided_slice %238 {offsets = [0, 96], sizes = [2, 32], strides = [1, 1]} : vector<2x128xf32> to vector<2x32xf32>
    %254 = arith.negf %253 : vector<2x32xf32>
    %255 = math.exp %254 : vector<2x32xf32>
    %cst_65 = arith.constant 1.000000e+00 : f32
    %256 = vector.broadcast %cst_65 : f32 to vector<2x32xf32>
    %257 = arith.addf %256, %255 : vector<2x32xf32>
    %258 = arith.divf %256, %257 : vector<2x32xf32>
    %259 = arith.mulf %250, %229 : vector<2x32xf32>
    %260 = arith.mulf %244, %252 : vector<2x32xf32>
    %261 = arith.addf %259, %260 : vector<2x32xf32>
    %262 = math.tanh %261 : vector<2x32xf32>
    %263 = arith.mulf %258, %262 : vector<2x32xf32>
    %264 = arith.index_cast %234 : i32 to index
    %c0_66 = arith.constant 0 : index
    %265 = vector.load %arg9[%264, %c0_66] : memref<16x32xf32, #tpu.memory_space<vmem>>, vector<2x32xf32>
    tpu.vector_store %arg9[%264, %c0_66], %263 {strides = array<i32>} : memref<16x32xf32, #tpu.memory_space<vmem>>, vector<2x32xf32>,
    %c8_i32 = arith.constant 8 : i32
    %c0_67 = arith.constant 0 : index
    %c0_68 = arith.constant 0 : index
    %266 = vector.load %arg9[%c0_67, %c0_68] : memref<16x32xf32, #tpu.memory_space<vmem>>, vector<16x32xf32>
    %c0_69 = arith.constant 0 : index
    %c0_70 = arith.constant 0 : index
    %267 = vector.load %arg5[%c0_69, %c0_70] : memref<32x128xf32, #tpu.memory_space<vmem>>, vector<32x128xf32>
    %cst_71 = arith.constant dense<0.000000e+00> : vector<16x128xf32>
    %268 = tpu.matmul %266, %267, %cst_71 {dimension_numbers = #tpu.dot_dimension_numbers<[1], [0], [0], [1], [0, 0, 1, 1], [], []>} : vector<16x32xf32>, vector<32x128xf32>, vector<16x128xf32> -> vector<16x128xf32>
    %c0_72 = arith.constant 0 : index
    %c0_73 = arith.constant 0 : index
    %269 = vector.load %arg6[%c0_72, %c0_73] : memref<1x128xf32, #tpu.memory_space<vmem>>, vector<1x128xf32>
    %270 = vector.broadcast %269 : vector<1x128xf32> to vector<16x128xf32>
    %271 = arith.addf %268, %270 : vector<16x128xf32>
    %c0_74 = arith.constant 0 : index
    %c0_75 = arith.constant 0 : index
    %272 = vector.load %arg7[%c0_74, %c0_75] : memref<16x128xf32, #tpu.memory_space<vmem>>, vector<16x128xf32>
    tpu.vector_store %arg7[%c0_74, %c0_75], %271 {strides = array<i32>} : memref<16x128xf32, #tpu.memory_space<vmem>>, vector<16x128xf32>,
    return
  }
  func.func @transform_0(%arg0: i32) -> (i32, i32) {
    %c0_i32 = arith.constant 0 : i32
    %c0_i32_0 = arith.constant 0 : i32
    %c0_i32_1 = arith.constant 0 : i32
    return %c0_i32, %c0_i32_0 : i32, i32
  }
  func.func @transform_1(%arg0: i32) -> (i32, i32) {
    %c0_i32 = arith.constant 0 : i32
    %c0_i32_0 = arith.constant 0 : i32
    %c0_i32_1 = arith.constant 0 : i32
    return %c0_i32, %c0_i32_0 : i32, i32
  }
  func.func @transform_2(%arg0: i32) -> (i32, i32) {
    %c0_i32 = arith.constant 0 : i32
    %c0_i32_0 = arith.constant 0 : i32
    %c0_i32_1 = arith.constant 0 : i32
    return %c0_i32, %c0_i32_0 : i32, i32
  }
  func.func @transform_3(%arg0: i32) -> (i32, i32) {
    %c0_i32 = arith.constant 0 : i32
    %c0_i32_0 = arith.constant 0 : i32
    %c0_i32_1 = arith.constant 0 : i32
    return %c0_i32, %c0_i32_0 : i32, i32
  }
  func.func @transform_4(%arg0: i32) -> (i32, i32) {
    %c0_i32 = arith.constant 0 : i32
    %c0_i32_0 = arith.constant 0 : i32
    %c0_i32_1 = arith.constant 0 : i32
    return %c0_i32, %c0_i32_0 : i32, i32
  }
  func.func @transform_5(%arg0: i32) -> (i32, i32) {
    %c0_i32 = arith.constant 0 : i32
    %c0_i32_0 = arith.constant 0 : i32
    %c0_i32_1 = arith.constant 0 : i32
    return %c0_i32, %c0_i32_0 : i32, i32
  }
  func.func @transform_6(%arg0: i32) -> (i32, i32) {
    %c0_i32 = arith.constant 0 : i32
    %c0_i32_0 = arith.constant 0 : i32
    %c0_i32_1 = arith.constant 0 : i32
    return %c0_i32, %c0_i32_0 : i32, i32
  }
}

</mosaic_0001>

<bundles_post_ra>
// kernel: decoder_forward.1
= control target key start
LH: loop header
LB: loop body
LE: loop exit
PB: predicated region body
PF: predicated region fallthrough
CT: control target
= control target key end

     0   :  { %vm36_vm0 = vcmask 261120   ;;  %v1366_v3 = vmov 0.0|0.0   ;;  %vm1367_vm1 = vmmov 0   ;;  %v1368_v4 = vmov 0.0   ;;  %s1369_s16 = smov 64   ;;  %s1564_s1 = inlined_call_operand.vmem [shape: f32[32,128], index: 1, kind: input, shape index: {}]   ;;  %s1565_s0 = inlined_call_operand.vmem [shape: f32[16,32], index: 0, kind: input, shape index: {}]   ;;  %s1566_s2 = inlined_call_operand.vmem [shape: f32[32,128], index: 2, kind: input, shape index: {}]   ;;  %s1567_s3 = inlined_call_operand.vmem [shape: f32[1,128], index: 3, kind: input, shape index: {}]   ;;  %s1568_s4 = inlined_call_operand.vmem [shape: f32[32,128], index: 4, kind: input, shape index: {}]   ;;  %s1569_s5 = inlined_call_operand.vmem [shape: f32[1,128], index: 5, kind: input, shape index: {}]   ;;  %s1570_s6 = inlined_call_operand.vmem [shape: f32[16,128], index: 6, kind: output, shape index: {}]  }
   0x1   :  { %v25_v0 = vld [vmem:[%s1564_s1] sm:$0xff]  ;;  %v26_v1 = vld [vmem:[%s1564_s1 + $0x8] sm:$0xff]  ;;  %v27_v2 = vld [vmem:[%s1564_s1 + $0x10] sm:$0xff]  ;;  %1241 = vmatprep.subr.bf16.mxu1 %v1366_v3  ;;  %1142 = vmatprep.mubr.msk.f32.mxu1 %vm1367_vm1, %v1368_v4  ;;  %vm227_vm2 = vcmask 254976  }
   0x2   :  { %v1233_v5 = vpack.c.bf16 %v26_v1, %v25_v0  ;;  %v28_v6 = vld [vmem:[%s1564_s1 + $0x18] sm:$0xff]  ;;  %v23_v7 = vld [vmem:[%s1565_s0] sm:$0xff]  ;;  %v121_v10 = vld [vmem:[%s1566_s2 + $0x8] sm:$0xff] }
   0x3   :  { %v1237_v8 = vpack.c.bf16 %v28_v6, %v27_v2  ;;  %1131 = vmatprep.mubr.msk.f32.mxu0 %vm36_vm0, %v23_v7  ;;  %v120_v9 = vld [vmem:[%s1566_s2] sm:$0xff]  ;;  %v122_v11 = vld [vmem:[%s1566_s2 + $0x10] sm:$0xff]  ;;  %v123_v13 = vld [vmem:[%s1566_s2 + $0x18] sm:$0xff] }
   0x4   :  { %1234 = vmatprep.subr.bf16.mxu0 %v1233_v5  ;;  %v1434_v12 = vpack.c.bf16 %v121_v10, %v120_v9  ;;  %v1440_v14 = vpack.c.bf16 %v123_v13, %v122_v11  ;;  %v24_v15 = vld [vmem:[%s1565_s0 + $0x8] sm:$0xff]  ;;  %v1050_v16 = vld [vmem:[%s1567_s3] ss:$0 sm:$0xff]  ;;  %s1370_s3 = smov 32  }
   0x5   :  { %1236 = vmatpush3.bf16.msra.mxu0 %v1233_v5 }
   0x6   :  { %1238 = vmatprep.subr.bf16.mxu0 %v1237_v8  ;;  %1243 = vmatpush3.bf16.msra.mxu1 %v1434_v12 }
   0x7   :  { %1244 = vmatprep.subr.bf16.mxu1 %v1366_v3 }
   0x9   :  { %1240 = vmatpush3.bf16.msra.mxu0 %v1237_v8 }
   0xa   :  { %1246 = vmatpush3.bf16.msra.mxu1 %v1440_v14  ;;  %1247 = vmatprep.subr.bf16.mxu0 %v1366_v3 }
   0xb   :  { %1253 = vmatprep.subr.bf16.mxu1 %v1366_v3 }
   0xc   :  { %1132 = vmatmul.mubr.msk.f32.vlgmr.msra.gmra.mrb[0].mxu0 %vm36_vm0, %v24_v15 }
   0xd   :  { %1143 = vmatmul.mubr.f32.vlgmr.msra.gmra.mrb[0].mxu1 %v1368_v4  ;;  %1249 = vmatpush3.bf16.msra.mxu0 %v1434_v12 }
   0xe   :  { %1250 = vmatprep.subr.bf16.mxu0 %v1366_v3  ;;  %1153 = vmatprep.mubr.msk.f32.mxu0 %vm1367_vm1, %v1368_v4 }
   0xf   :  { %1255 = vmatpush3.bf16.msra.mxu1 %v1434_v12  ;;  %1164 = vmatprep.mubr.msk.f32.mxu1 %vm1367_vm1, %v1368_v4 }
  0x10   :  { %1256 = vmatprep.subr.bf16.mxu1 %v1366_v3 }
  0x11   :  { %1252 = vmatpush3.bf16.msra.mxu0 %v1440_v14 }
  0x12   :  { %1259 = vmatprep.subr.bf16.mxu0 %v1366_v3 }
  0x13   :  { %1258 = vmatpush3.bf16.msra.mxu1 %v1440_v14 }
  0x14   :  { %1265 = vmatprep.subr.bf16.mxu1 %v1366_v3 }
  0xdf   :  { %v1133_v17 = vpop.f32.mrb[0].mxu0 }
  0xe0   :  { %v115_v18 = vadd.f32 %v1133_v17, %v1050_v16  ;;  %v109_v19 = vpop.f32.mrb[1].mxu0  ;;  %v194_v20 = vpop.f32.mrb[0].mxu1 }
  0xe1   :  { %v110_v21 = vadd.f32 %v1050_v16, %v109_v19  ;;  %v1144_v22 = vpop.f32.mrb[1].mxu1 }
  0xe2   :  { %119 = vst [vmem:[#allocation2 + $0x8] sm:$0xff] %v115_v18 }
  0xe3   :  { %118 = vst [vmem:[#allocation2] sm:$0xff] %v110_v21 }
  0xea   :  { %v124_v23 = vld [vmem:[#allocation2] sm:$0x3]  ;;  %v229_v39 = vld [vmem:[#allocation2 + $0x2] sm:$0x3]  ;;  %v332_v57 = vld [vmem:[#allocation2 + $0x4] sm:$0x3] }
  0xeb   :  { %v198_v24 = vadd.f32 %v194_v20, %v124_v23  ;;  %v435_v15 = vld [vmem:[#allocation2 + $0x6] sm:$0x3] }
  0xed   :  { %1302 = vtanh.f32 %v198_v24  ;;  %v1053_v26 = vmul.f32 -1.442695, %v198_v24 }
  0xef   :  { %1304 = vpow2.f32 %v1053_v26 }
  0xf7   :  { %v1303_v25 = vpop.eup %1302 }
  0xf8   :  { %208 = vrot.lane.b32.xlu0 %v1303_v25, %s1369_s16 }
  0xf9   :  { %v1305_v27 = vpop.eup %1304 }
  0xfa   :  { %v202_v28 = vadd.f32 1.0, %v1305_v27 }
  0xfc   :  { %1306 = vrcp.f32 %v202_v28 }
 0x106   :  { %v1307_v29 = vpop.eup %1306 }
 0x107   :  { %v206_v32 = vmul.f32 0.0, %v1307_v29 }
 0x16a   :  { %v209_v30 = vpop.permute.xlu0 %208 }
 0x16b   :  { %v211_v31 = vmul.f32 %v1307_v29, %v209_v30 }
 0x16d   :  { %213 = vrot.lane.b32.xlu0 %v211_v31, %s1370_s3 }
 0x1df   :  { %v214_v33 = vpop.permute.xlu0 %213 }
 0x1e0   :  { %v216_v34 = vadd.f32 %v214_v33, %v206_v32  ;;  %v538_v33 = vld [vmem:[#allocation2 + $0x8] sm:$0x3] }
 0x1e2   :  { %1308 = vtanh.f32 %v216_v34 }
 0x1ec   :  { %v1309_v35 = vpop.eup %1308 }
 0x1ed   :  { %219 = vrot.lane.b32.xlu1 %v1309_v35, %s1369_s16 }
 0x25f   :  { %v220_v36 = vpop.permute.xlu1 %219 }
 0x260   :  { %v222_v37 = vmul.f32 %v1307_v29, %v220_v36 }
 0x262   :  { %224 = vrot.lane.b32.xlu1 %v222_v37, %s1370_s3 }
 0x2d4   :  { %v225_v38 = vpop.permute.xlu1 %224 }
 0x2d5   :  { %228 = vst.msk [vmem:[#allocation3] sm:$0x3] %vm227_vm2, %v225_v38  ;;  %1154 = vmatmul.mubr.msk.f32.vlgmr.msra.gmra.mrb[2].mxu0 %vm36_vm0, %v225_v38 }
 0x2d6   :  { %1261 = vmatpush3.bf16.msra.mxu0 %v1434_v12  ;;  %1175 = vmatprep.mubr.msk.f32.mxu0 %vm1367_vm1, %v1368_v4 }
 0x2d7   :  { %1262 = vmatprep.subr.bf16.mxu0 %v1366_v3 }
 0x2da   :  { %1264 = vmatpush3.bf16.msra.mxu0 %v1440_v14 }
 0x2db   :  { %1271 = vmatprep.subr.bf16.mxu0 %v1366_v3 }
 0x3a8   :  { %v298_v40 = vpop.f32.mrb[2].mxu0 }
 0x3a9   :  { %v302_v41 = vadd.f32 %v298_v40, %v229_v39  ;;  %v1155_v42 = vpop.f32.mrb[3].mxu0 }
 0x3ab   :  { %1310 = vtanh.f32 %v302_v41  ;;  %v1055_v44 = vmul.f32 -1.442695, %v302_v41 }
 0x3ad   :  { %1312 = vpow2.f32 %v1055_v44 }
 0x3b5   :  { %v1311_v43 = vpop.eup %1310 }
 0x3b6   :  { %312 = vrot.lane.b32.xlu0 %v1311_v43, %s1369_s16 }
 0x3b7   :  { %v1313_v45 = vpop.eup %1312 }
 0x3b8   :  { %v306_v46 = vadd.f32 1.0, %v1313_v45 }
 0x3ba   :  { %1314 = vrcp.f32 %v306_v46 }
 0x3c4   :  { %v1315_v47 = vpop.eup %1314 }
 0x3c5   :  { %v310_v50 = vmul.f32 %v1315_v47, %v216_v34 }
 0x428   :  { %v313_v48 = vpop.permute.xlu0 %312 }
 0x429   :  { %v315_v49 = vmul.f32 %v1315_v47, %v313_v48 }
 0x42b   :  { %317 = vrot.lane.b32.xlu1 %v315_v49, %s1370_s3 }
 0x49d   :  { %v318_v51 = vpop.permute.xlu1 %317 }
 0x49e   :  { %v320_v52 = vadd.f32 %v318_v51, %v310_v50  ;;  %v641_v51 = vld [vmem:[#allocation2 + $0xa] sm:$0x3] }
 0x4a0   :  { %1316 = vtanh.f32 %v320_v52 }
 0x4aa   :  { %v1317_v53 = vpop.eup %1316 }
 0x4ab   :  { %323 = vrot.lane.b32.xlu0 %v1317_v53, %s1369_s16 }
 0x51d   :  { %v324_v54 = vpop.permute.xlu0 %323 }
 0x51e   :  { %v326_v55 = vmul.f32 %v1315_v47, %v324_v54 }
 0x520   :  { %328 = vrot.lane.b32.xlu1 %v326_v55, %s1370_s3 }
 0x592   :  { %v329_v56 = vpop.permute.xlu1 %328 }
 0x593   :  { %331 = vst.msk [vmem:[#allocation3 + $0x2] sm:$0x3] %vm227_vm2, %v329_v56  ;;  %1165 = vmatmul.mubr.msk.f32.vlgmr.msra.gmra.mrb[2].mxu1 %vm36_vm0, %v329_v56 }
 0x594   :  { %1267 = vmatpush3.bf16.msra.mxu1 %v1434_v12  ;;  %1186 = vmatprep.mubr.msk.f32.mxu1 %vm1367_vm1, %v1368_v4 }
 0x595   :  { %1268 = vmatprep.subr.bf16.mxu1 %v1366_v3 }
 0x598   :  { %1270 = vmatpush3.bf16.msra.mxu1 %v1440_v14 }
 0x599   :  { %1277 = vmatprep.subr.bf16.mxu1 %v1366_v3 }
 0x666   :  { %v401_v58 = vpop.f32.mrb[2].mxu1 }
 0x667   :  { %v405_v59 = vadd.f32 %v401_v58, %v332_v57  ;;  %v1166_v60 = vpop.f32.mrb[3].mxu1 }
 0x669   :  { %1318 = vtanh.f32 %v405_v59  ;;  %v1057_v62 = vmul.f32 -1.442695, %v405_v59 }
 0x66b   :  { %1320 = vpow2.f32 %v1057_v62 }
 0x673   :  { %v1319_v61 = vpop.eup %1318 }
 0x674   :  { %415 = vrot.lane.b32.xlu0 %v1319_v61, %s1369_s16 }
 0x675   :  { %v1321_v63 = vpop.eup %1320 }
 0x676   :  { %v409_v0 = vadd.f32 1.0, %v1321_v63 }
 0x678   :  { %1322 = vrcp.f32 %v409_v0 }
 0x682   :  { %v1323_v1 = vpop.eup %1322 }
 0x683   :  { %v413_v6 = vmul.f32 %v1323_v1, %v320_v52 }
 0x6e6   :  { %v416_v2 = vpop.permute.xlu0 %415 }
 0x6e7   :  { %v418_v5 = vmul.f32 %v1323_v1, %v416_v2  ;;  %v744_v2 = vld [vmem:[#allocation2 + $0xc] sm:$0x3] }
 0x6e9   :  { %420 = vrot.lane.b32.xlu1 %v418_v5, %s1370_s3 }
 0x75b   :  { %v421_v7 = vpop.permute.xlu1 %420 }
 0x75c   :  { %v423_v8 = vadd.f32 %v421_v7, %v413_v6 }
 0x75e   :  { %1324 = vtanh.f32 %v423_v8 }
 0x768   :  { %v1325_v9 = vpop.eup %1324 }
 0x769   :  { %426 = vrot.lane.b32.xlu0 %v1325_v9, %s1369_s16 }
 0x7db   :  { %v427_v10 = vpop.permute.xlu0 %426 }
 0x7dc   :  { %v429_v11 = vmul.f32 %v1323_v1, %v427_v10 }
 0x7de   :  { %431 = vrot.lane.b32.xlu1 %v429_v11, %s1370_s3 }
 0x850   :  { %v432_v13 = vpop.permute.xlu1 %431 }
 0x851   :  { %434 = vst.msk [vmem:[#allocation3 + $0x4] sm:$0x3] %vm227_vm2, %v432_v13  ;;  %1176 = vmatmul.mubr.msk.f32.vlgmr.msra.gmra.mrb[4].mxu0 %vm36_vm0, %v432_v13 }
 0x852   :  { %1273 = vmatpush3.bf16.msra.mxu0 %v1434_v12  ;;  %1197 = vmatprep.mubr.msk.f32.mxu0 %vm1367_vm1, %v1368_v4 }
 0x853   :  { %1274 = vmatprep.subr.bf16.mxu0 %v1366_v3 }
 0x856   :  { %1276 = vmatpush3.bf16.msra.mxu0 %v1440_v14 }
 0x857   :  { %1283 = vmatprep.subr.bf16.mxu0 %v1366_v3 }
 0x924   :  { %v504_v16 = vpop.f32.mrb[4].mxu0 }
 0x925   :  { %v508_v17 = vadd.f32 %v504_v16, %v435_v15  ;;  %v1177_v18 = vpop.f32.mrb[5].mxu0 }
 0x927   :  { %1326 = vtanh.f32 %v508_v17  ;;  %v1059_v20 = vmul.f32 -1.442695, %v508_v17 }
 0x929   :  { %1328 = vpow2.f32 %v1059_v20 }
 0x931   :  { %v1327_v19 = vpop.eup %1326 }
 0x932   :  { %518 = vrot.lane.b32.xlu0 %v1327_v19, %s1369_s16 }
 0x933   :  { %v1329_v21 = vpop.eup %1328 }
 0x934   :  { %v512_v22 = vadd.f32 1.0, %v1329_v21 }
 0x936   :  { %1330 = vrcp.f32 %v512_v22 }
 0x940   :  { %v1331_v23 = vpop.eup %1330 }
 0x941   :  { %v516_v26 = vmul.f32 %v1331_v23, %v423_v8 }
 0x9a4   :  { %v519_v24 = vpop.permute.xlu0 %518 }
 0x9a5   :  { %v521_v25 = vmul.f32 %v1331_v23, %v519_v24  ;;  %v847_v24 = vld [vmem:[#allocation2 + $0xe] sm:$0x3] }
 0x9a7   :  { %523 = vrot.lane.b32.xlu1 %v521_v25, %s1370_s3 }
 0xa19   :  { %v524_v27 = vpop.permute.xlu1 %523 }
 0xa1a   :  { %v526_v28 = vadd.f32 %v524_v27, %v516_v26 }
 0xa1c   :  { %1332 = vtanh.f32 %v526_v28 }
 0xa26   :  { %v1333_v29 = vpop.eup %1332 }
 0xa27   :  { %529 = vrot.lane.b32.xlu0 %v1333_v29, %s1369_s16 }
 0xa99   :  { %v530_v30 = vpop.permute.xlu0 %529 }
 0xa9a   :  { %v532_v31 = vmul.f32 %v1331_v23, %v530_v30 }
 0xa9c   :  { %534 = vrot.lane.b32.xlu1 %v532_v31, %s1370_s3 }
 0xb0e   :  { %v535_v32 = vpop.permute.xlu1 %534 }
 0xb0f   :  { %537 = vst.msk [vmem:[#allocation3 + $0x6] sm:$0x3] %vm227_vm2, %v535_v32  ;;  %1187 = vmatmul.mubr.msk.f32.vlgmr.msra.gmra.mrb[4].mxu1 %vm36_vm0, %v535_v32 }
 0xb10   :  { %1279 = vmatpush3.bf16.msra.mxu1 %v1434_v12  ;;  %1208 = vmatprep.mubr.msk.f32.mxu1 %vm1367_vm1, %v1368_v4 }
 0xb11   :  { %1280 = vmatprep.subr.bf16.mxu1 %v1366_v3 }
 0xb14   :  { %1282 = vmatpush3.bf16.msra.mxu1 %v1440_v14 }
 0xb16   :  { %v950_v1 = vld [vmem:[#allocation3] sm:$0xff] }
 0xbe2   :  { %v607_v34 = vpop.f32.mrb[4].mxu1 }
 0xbe3   :  { %v611_v35 = vadd.f32 %v607_v34, %v538_v33  ;;  %v1188_v36 = vpop.f32.mrb[5].mxu1 }
 0xbe5   :  { %1334 = vtanh.f32 %v611_v35  ;;  %v1061_v38 = vmul.f32 -1.442695, %v611_v35 }
 0xbe7   :  { %1336 = vpow2.f32 %v1061_v38 }
 0xbef   :  { %v1335_v37 = vpop.eup %1334 }
 0xbf0   :  { %621 = vrot.lane.b32.xlu0 %v1335_v37, %s1369_s16 }
 0xbf1   :  { %v1337_v39 = vpop.eup %1336 }
 0xbf2   :  { %v615_v40 = vadd.f32 1.0, %v1337_v39  ;;  %v952_v39 = vld [vmem:[%s1568_s4] sm:$0xff] }
 0xbf4   :  { %1338 = vrcp.f32 %v615_v40  ;;  %v953_v40 = vld [vmem:[%s1568_s4 + $0x8] sm:$0xff] }
 0xbfe   :  { %v1339_v41 = vpop.eup %1338 }
 0xbff   :  { %v619_v44 = vmul.f32 %v1339_v41, %v526_v28 }
 0xc62   :  { %v622_v42 = vpop.permute.xlu0 %621 }
 0xc63   :  { %v624_v43 = vmul.f32 %v1339_v41, %v622_v42  ;;  %v954_v42 = vld [vmem:[%s1568_s4 + $0x10] sm:$0xff] }
 0xc65   :  { %626 = vrot.lane.b32.xlu1 %v624_v43, %s1370_s3  ;;  %v955_v43 = vld [vmem:[%s1568_s4 + $0x18] sm:$0xff] }
 0xcd7   :  { %v627_v45 = vpop.permute.xlu1 %626 }
 0xcd8   :  { %v629_v46 = vadd.f32 %v627_v45, %v619_v44  ;;  %v1293_v44 = vpack.c.bf16 %v955_v43, %v954_v42 }
 0xcda   :  { %1340 = vtanh.f32 %v629_v46 }
 0xce4   :  { %v1341_v47 = vpop.eup %1340 }
 0xce5   :  { %632 = vrot.lane.b32.xlu0 %v1341_v47, %s1369_s16 }
 0xd57   :  { %v633_v48 = vpop.permute.xlu0 %632 }
 0xd58   :  { %v635_v49 = vmul.f32 %v1339_v41, %v633_v48  ;;  %v1289_v41 = vpack.c.bf16 %v953_v40, %v952_v39 }
 0xd5a   :  { %637 = vrot.lane.b32.xlu1 %v635_v49, %s1370_s3  ;;  %1290 = vmatprep.subr.bf16.mxu1 %v1289_v41  ;;  %v1068_v49 = vld [vmem:[%s1569_s5] ss:$0 sm:$0xff] }
 0xdcc   :  { %v638_v50 = vpop.permute.xlu1 %637 }
 0xdcd   :  { %640 = vst.msk [vmem:[#allocation3 + $0x8] sm:$0x3] %vm227_vm2, %v638_v50  ;;  %1198 = vmatmul.mubr.msk.f32.vlgmr.msra.gmra.mrb[6].mxu0 %vm36_vm0, %v638_v50 }
 0xdce   :  { %1285 = vmatpush3.bf16.msra.mxu0 %v1434_v12  ;;  %1219 = vmatprep.mubr.msk.f32.mxu0 %vm1367_vm1, %v1368_v4 }
 0xdcf   :  { %1286 = vmatprep.subr.bf16.mxu0 %v1366_v3 }
 0xdd2   :  { %1288 = vmatpush3.bf16.msra.mxu0 %v1440_v14 }
 0xea0   :  { %v710_v52 = vpop.f32.mrb[6].mxu0 }
 0xea1   :  { %v714_v53 = vadd.f32 %v710_v52, %v641_v51  ;;  %v1199_v54 = vpop.f32.mrb[7].mxu0 }
 0xea3   :  { %1342 = vtanh.f32 %v714_v53  ;;  %v1063_v56 = vmul.f32 -1.442695, %v714_v53 }
 0xea5   :  { %1344 = vpow2.f32 %v1063_v56 }
 0xead   :  { %v1343_v55 = vpop.eup %1342 }
 0xeae   :  { %724 = vrot.lane.b32.xlu0 %v1343_v55, %s1369_s16 }
 0xeaf   :  { %v1345_v57 = vpop.eup %1344 }
 0xeb0   :  { %v718_v58 = vadd.f32 1.0, %v1345_v57 }
 0xeb2   :  { %1346 = vrcp.f32 %v718_v58 }
 0xebc   :  { %v1347_v12 = vpop.eup %1346 }
 0xebd   :  { %v722_v3 = vmul.f32 %v1347_v12, %v629_v46 }
 0xf20   :  { %v725_v59 = vpop.permute.xlu0 %724 }
 0xf21   :  { %v727_v4 = vmul.f32 %v1347_v12, %v725_v59 }
 0xf23   :  { %729 = vrot.lane.b32.xlu1 %v727_v4, %s1370_s3 }
 0xf95   :  { %v730_v14 = vpop.permute.xlu1 %729 }
 0xf96   :  { %v732_v60 = vadd.f32 %v730_v14, %v722_v3 }
 0xf98   :  { %1348 = vtanh.f32 %v732_v60 }
 0xfa2   :  { %v1349_v61 = vpop.eup %1348 }
 0xfa3   :  { %735 = vrot.lane.b32.xlu0 %v1349_v61, %s1369_s16 }
0x1015   :  { %v736_v62 = vpop.permute.xlu0 %735 }
0x1016   :  { %v738_v63 = vmul.f32 %v1347_v12, %v736_v62 }
0x1018   :  { %740 = vrot.lane.b32.xlu1 %v738_v63, %s1370_s3 }
0x108a   :  { %v741_v0 = vpop.permute.xlu1 %740 }
0x108b   :  { %743 = vst.msk [vmem:[#allocation3 + $0xa] sm:$0x3] %vm227_vm2, %v741_v0  ;;  %1209 = vmatmul.mubr.msk.f32.vlgmr.msra.gmra.mrb[6].mxu1 %vm36_vm0, %v741_v0 }
0x108c   :  { %1230 = vmatprep.mubr.msk.f32.mxu1 %vm36_vm0, %v950_v1  ;;  %1292 = vmatpush3.bf16.msra.mxu1 %v1289_v41 }
0x108d   :  { %1294 = vmatprep.subr.bf16.mxu1 %v1293_v44 }
0x1090   :  { %1296 = vmatpush3.bf16.msra.mxu1 %v1293_v44 }
0x115e   :  { %v813_v5 = vpop.f32.mrb[6].mxu1 }
0x115f   :  { %v817_v6 = vadd.f32 %v813_v5, %v744_v2  ;;  %v1210_v7 = vpop.f32.mrb[7].mxu1 }
0x1161   :  { %1350 = vtanh.f32 %v817_v6  ;;  %v1065_v9 = vmul.f32 -1.442695, %v817_v6 }
0x1163   :  { %1352 = vpow2.f32 %v1065_v9 }
0x116b   :  { %v1351_v8 = vpop.eup %1350 }
0x116c   :  { %827 = vrot.lane.b32.xlu0 %v1351_v8, %s1369_s16 }
0x116d   :  { %v1353_v10 = vpop.eup %1352 }
0x116e   :  { %v821_v11 = vadd.f32 1.0, %v1353_v10 }
0x1170   :  { %1354 = vrcp.f32 %v821_v11 }
0x117a   :  { %v1355_v13 = vpop.eup %1354 }
0x117b   :  { %v825_v17 = vmul.f32 %v1355_v13, %v732_v60 }
0x11de   :  { %v828_v15 = vpop.permute.xlu0 %827 }
0x11df   :  { %v830_v16 = vmul.f32 %v1355_v13, %v828_v15 }
0x11e1   :  { %832 = vrot.lane.b32.xlu1 %v830_v16, %s1370_s3 }
0x1253   :  { %v833_v18 = vpop.permute.xlu1 %832 }
0x1254   :  { %v835_v19 = vadd.f32 %v833_v18, %v825_v17 }
0x1256   :  { %1356 = vtanh.f32 %v835_v19 }
0x1260   :  { %v1357_v20 = vpop.eup %1356 }
0x1261   :  { %838 = vrot.lane.b32.xlu0 %v1357_v20, %s1369_s16 }
0x12d3   :  { %v839_v21 = vpop.permute.xlu0 %838 }
0x12d4   :  { %v841_v22 = vmul.f32 %v1355_v13, %v839_v21 }
0x12d6   :  { %843 = vrot.lane.b32.xlu1 %v841_v22, %s1370_s3 }
0x1348   :  { %v844_v23 = vpop.permute.xlu1 %843 }
0x1349   :  { %846 = vst.msk [vmem:[#allocation3 + $0xc] sm:$0x3] %vm227_vm2, %v844_v23  ;;  %1220 = vmatmul.mubr.msk.f32.vlgmr.msra.gmra.mrb[8].mxu0 %vm36_vm0, %v844_v23 }
0x141c   :  { %v916_v25 = vpop.f32.mrb[8].mxu0 }
0x141d   :  { %v920_v26 = vadd.f32 %v916_v25, %v847_v24  ;;  %v1221_v27 = vpop.f32.mrb[9].mxu0 }
0x141f   :  { %1358 = vtanh.f32 %v920_v26  ;;  %v1067_v29 = vmul.f32 -1.442695, %v920_v26 }
0x1421   :  { %1360 = vpow2.f32 %v1067_v29 }
0x1429   :  { %v1359_v28 = vpop.eup %1358 }
0x142a   :  { %930 = vrot.lane.b32.xlu0 %v1359_v28, %s1369_s16 }
0x142b   :  { %v1361_v30 = vpop.eup %1360 }
0x142c   :  { %v924_v31 = vadd.f32 1.0, %v1361_v30 }
0x142e   :  { %1362 = vrcp.f32 %v924_v31 }
0x1438   :  { %v1363_v32 = vpop.eup %1362 }
0x1439   :  { %v928_v35 = vmul.f32 %v1363_v32, %v835_v19 }
0x149c   :  { %v931_v33 = vpop.permute.xlu0 %930 }
0x149d   :  { %v933_v34 = vmul.f32 %v1363_v32, %v931_v33 }
0x149f   :  { %935 = vrot.lane.b32.xlu1 %v933_v34, %s1370_s3 }
0x1511   :  { %v936_v36 = vpop.permute.xlu1 %935 }
0x1512   :  { %v938_v37 = vadd.f32 %v936_v36, %v928_v35 }
0x1514   :  { %1364 = vtanh.f32 %v938_v37 }
0x151e   :  { %v1365_v38 = vpop.eup %1364 }
0x151f   :  { %941 = vrot.lane.b32.xlu0 %v1365_v38, %s1369_s16 }
0x1591   :  { %v942_v45 = vpop.permute.xlu0 %941 }
0x1592   :  { %v944_v46 = vmul.f32 %v1363_v32, %v942_v45 }
0x1594   :  { %946 = vrot.lane.b32.xlu1 %v944_v46, %s1370_s3 }
0x1606   :  { %v947_v47 = vpop.permute.xlu1 %946 }
0x1607   :  { %949 = vst.msk [vmem:[#allocation3 + $0xe] sm:$0x3] %vm227_vm2, %v947_v47 }
0x160e   :  { %v951_v48 = vld [vmem:[#allocation3 + $0x8] sm:$0xff] }
0x160f   :  { %1231 = vmatmul.mubr.msk.f32.vlgmr.msra.gmra.mrb[8].mxu1 %vm36_vm0, %v951_v48 }
0x16e2   :  { %v1232_v50 = vpop.f32.mrb[8].mxu1 }
0x16e3   :  { %v1041_v51 = vadd.f32 %v1232_v50, %v1068_v49  ;;  %v1035_v52 = vpop.f32.mrb[9].mxu1 }
0x16e4   :  { %v1036_v53 = vadd.f32 %v1068_v49, %v1035_v52 }
0x16e5   :  { %1045 = vst [vmem:[%s1570_s6 + $0x8] sm:$0xff] %v1041_v51 }
0x16e6   :  { %1044 = vst [vmem:[%s1570_s6] sm:$0xff] %v1036_v53 }

</bundles_post_ra>
